<compile_context>
chip_gen: v6e
topology: v6e:2x2x1
jax: 0.10.0
libtpu: 0.0.40
codegen_flags: <defaults>
</compile_context>

<pallas_src>
import functools
import jax
import jax.numpy as jnp
from jax import lax
from jax.experimental import pallas as pl
from jax.experimental.pallas import tpu as pltpu


def _value_kernel(params_ref, batch_ref, out_ref, *,
                  T, A, H, ratio, is_atk, inv_B):
    # Resident [1,1] accumulator across the batch grid axis.
    @pl.when(pl.program_id(0) == 0)
    def _():
        out_ref[...] = jnp.zeros_like(out_ref)

    p = params_ref[...]                          # [T+A+5, C]  f32
    w1    = p[0:T,                 0:H]          # [T, H]
    atk_T = p[T:T + A,             0:T]          # [A, T]   (= atk_s^T)
    prior = p[T + A:T + A + 1,     0:T]          # [1, T]
    dfd   = p[T + A + 1:T + A + 2, 0:A]          # [1, A]
    b1    = p[T + A + 2:T + A + 3, 0:H]          # [1, H]
    w2r   = p[T + A + 3:T + A + 4, 0:H]          # [1, H]   (= w2^T)
    b2    = p[T + A + 4:T + A + 5, 0:1]          # [1, 1]

    bat = batch_ref[...]                         # [Bt, 4]  f32
    Bt = bat.shape[0]
    a_atk = bat[:, 0:1].astype(jnp.int32)        # [Bt, 1]
    a_dfd = bat[:, 1:2].astype(jnp.int32)        # [Bt, 1]
    typs  = bat[:, 2:3].astype(jnp.int32)        # [Bt, 1]
    rew   = bat[:, 3:4]                          # [Bt, 1]

    # Single iota reused for attacker/defender one-hots.
    iota_a = lax.broadcasted_iota(jnp.int32, (Bt, A), 1)
    oh_a = (iota_a == a_atk).astype(jnp.float32)               # [Bt, A]

    # ---- Bayes posterior: belief[b,t] = prior[t]*atk[t,a_b] / denom_b ----
    lik = jnp.dot(oh_a, atk_T, preferred_element_type=jnp.float32)  # [Bt, T]
    unnorm = lik * prior                                            # [Bt, T]
    denom = jnp.sum(unnorm, axis=-1, keepdims=True)                 # [Bt, 1]
    belief = unnorm * pl.reciprocal(denom, approx=False)            # [Bt, T]

    # ---- value network vn(belief): 2-layer MLP -> [Bt, 1] ----
    h = jnp.maximum(
        jnp.dot(belief, w1, preferred_element_type=jnp.float32) + b1, 0.0)
    vn_out = jnp.sum(h * w2r, axis=-1, keepdims=True) + b2          # H->1 as VPU reduce
    next_v = ratio * vn_out                                         # [Bt, 1]
    # .detach() is gradient-only; forward value identical.

    if is_atk:
        # pi[b] = sum_t prior[t]*atk[t,a_b]  == denom (reuse, no extra matmul)
        pi = denom
        # pi_t[b] = atk[type_b, a_b] = lik[b, type_b]  (masked lane reduce)
        iota_t = lax.broadcasted_iota(jnp.int32, (Bt, T), 1)
        oh_t = (iota_t == typs).astype(jnp.float32)
        pi_t = jnp.sum(lik * oh_t, axis=-1, keepdims=True)
        v = rew * jnp.log(pi_t) + next_v * (jnp.log(pi) + 1.0)
    else:
        oh_d = (iota_a == a_dfd).astype(jnp.float32)
        pi = jnp.sum(oh_d * dfd, axis=-1, keepdims=True)            # VPU, no MXU
        v = (rew + next_v) * jnp.log(pi) + next_v

    out_ref[...] += jnp.sum(v, axis=0, keepdims=True) * inv_B       # [1, 1]


def value_forward(prior, atk_s, dfd_s, types, actions, rewards,
                  w1, b1, w2, b2, *, ratio, is_atk):
    """Returns the scalar v.mean(), matching the PyTorch module's forward."""
    B = actions.shape[0]
    T, A = atk_s.shape
    H = w1.shape[1]
    C = max(T, A, H)
    R = T + A + 5

    def pad_row(v):
        v = jnp.asarray(v, jnp.float32).reshape(1, -1)
        return jnp.pad(v, ((0, 0), (0, C - v.shape[1])))

    def pad_mat(m):
        m = jnp.asarray(m, jnp.float32)
        return jnp.pad(m, ((0, 0), (0, C - m.shape[1])))

    params = jnp.concatenate([
        pad_mat(w1),                    # rows 0 : T
        pad_mat(jnp.asarray(atk_s).T),  # rows T : T+A
        pad_row(prior),                 # row  T+A
        pad_row(dfd_s),                 # row  T+A+1
        pad_row(b1),                    # row  T+A+2
        pad_row(jnp.asarray(w2).reshape(-1)),  # row T+A+3
        pad_row(b2),                    # row  T+A+4
    ], axis=0)                          # [R, C]

    batch = jnp.concatenate([
        jnp.asarray(actions, jnp.float32).reshape(B, 2),
        jnp.asarray(types, jnp.float32).reshape(B, 1),
        jnp.asarray(rewards, jnp.float32).reshape(B, 1),
    ], axis=1)                          # [B, 4]

    # Batch tiling: grid over B when it divides evenly into 512-row tiles.
    # TODO(synk): pad/mask ragged batches and (on v7x) shard the batch axis
    # across both TensorCores with per-core partial sums.
    TB = 512
    tb = TB if (B % TB == 0 and B >= TB) else B
    grid = (B // tb,)

    kernel = functools.partial(
        _value_kernel, T=T, A=A, H=H,
        ratio=float(ratio), is_atk=bool(is_atk), inv_B=1.0 / float(B))

    out = pl.pallas_call(
        kernel,
        out_shape=jax.ShapeDtypeStruct((1, 1), jnp.float32),
        grid=grid,
        in_specs=[
            pl.BlockSpec((R, C), lambda i: (0, 0)),    # packed params (resident)
            pl.BlockSpec((tb, 4), lambda i: (i, 0)),   # per-sample data, tiled on B
        ],
        out_specs=pl.BlockSpec((1, 1), lambda i: (0, 0)),
        compiler_params=pltpu.CompilerParams(
            dimension_semantics=("arbitrary",)),       # accumulator axis
    )(params, batch)
    return out[0, 0]


def value_forward_ref(prior, atk_s, dfd_s, types, actions, rewards,
                      w1, b1, w2, b2, *, ratio, is_atk):
    """Pure-JAX reference mirroring the PyTorch code path."""
    a0 = actions[:, 0]
    lik = atk_s[:, a0].T                               # [B, T]
    unnorm = lik * prior[None, :]
    belief = unnorm / unnorm.sum(-1, keepdims=True)    # Bayes(prior, atk_s, a0)
    h = jnp.maximum(belief @ w1 + b1[None, :], 0.0)
    next_v = ratio * (h @ w2 + b2[None, :])[:, 0]      # vn(new_belief), squeezed
    if is_atk:
        marginal = prior @ atk_s
        pi = marginal[a0]
        pi_t = atk_s[types, a0]
        v = rewards * jnp.log(pi_t) + next_v * jnp.log(pi) + next_v
    else:
        pi = dfd_s[actions[:, 1]]
        v = (rewards + next_v) * jnp.log(pi) + next_v
    return v.mean()


if __name__ == "__main__":
    n_types, n_actions, hidden = 4, 5, 32
    ratio = 0.9

    key = jax.random.PRNGKey(0)
    k = jax.random.split(key, 12)

    prior = jax.nn.softmax(jax.random.normal(k[0], (n_types,)))
    atk_s = jax.nn.softmax(jax.random.normal(k[1], (n_types, n_actions)), axis=-1)
    dfd_s = jax.nn.softmax(jax.random.normal(k[2], (n_actions,)))

    # Deterministic vn parameters: 2-layer MLP n_types -> H -> 1.
    w1 = 0.3 * jax.random.normal(k[3], (n_types, hidden))
    b1 = jnp.zeros((hidden,), jnp.float32)
    w2 = 0.3 * jax.random.normal(k[4], (hidden, 1))
    b2 = jnp.zeros((1,), jnp.float32)

    ok = True
    for bi, B in enumerate((8, 1024)):   # small block + tiled-grid path
        kk = jax.random.split(k[5 + bi], 4)
        types = jax.random.randint(kk[0], (B,), 0, n_types, dtype=jnp.int32)
        actions = jnp.stack(
            [jax.random.randint(kk[1], (B,), 0, n_actions, dtype=jnp.int32),
             jax.random.randint(kk[2], (B,), 0, n_actions, dtype=jnp.int32)],
            axis=1)
        rewards = jax.random.normal(kk[3], (B,))

        for is_atk in (True, False):
            out = value_forward(prior, atk_s, dfd_s, types, actions, rewards,
                                w1, b1, w2, b2, ratio=ratio, is_atk=is_atk)
            out = jax.block_until_ready(out)
            ref = value_forward_ref(prior, atk_s, dfd_s, types, actions, rewards,
                                    w1, b1, w2, b2, ratio=ratio, is_atk=is_atk)
            if not jnp.allclose(out, ref, atol=1e-4, rtol=1e-4):
                ok = False
                print("MISMATCH", B, is_atk, float(out), float(ref))

    if ok:
        print("KERNEL_OK")
</pallas_src>

<mosaic_0001>
module attributes {stable_mosaic.version = 11 : i64} {
  func.func @_value_kernel(%arg0: i32, %arg1: memref<14x32xf32, #tpu.memory_space<vmem>>, %arg2: memref<8x4xf32, #tpu.memory_space<vmem>>, %arg3: memref<1x1xf32, #tpu.memory_space<vmem>>) attributes {dimension_semantics = [#tpu.dimension_semantics<arbitrary>], iteration_bounds = array<i64: 1>, scalar_prefetch = 0 : i64, scratch_operands = 0 : i64, tpu.core_type = #tpu.core_type<tc>, window_params = [{pipeline_mode = #tpu.pipeline_mode<synchronous>, transform_indices = @transform_0, window_bounds = array<i64: 14, 32>}, {transform_indices = @transform_1, window_bounds = array<i64: 8, 4>}, {pipeline_mode = #tpu.pipeline_mode<synchronous>, transform_indices = @transform_2, window_bounds = array<i64: 1, 1>}]} {
    %c0_i32 = arith.constant 0 : i32
    %0 = arith.cmpi eq, %arg0, %c0_i32 : i32
    %1 = arith.extui %0 : i1 to i32
    %c0_i32_0 = arith.constant 0 : i32
    %2 = arith.cmpi ne, %1, %c0_i32_0 : i32
    scf.if %2 {
      %cst_17 = arith.constant 0.000000e+00 : f32
      %64 = vector.broadcast %cst_17 : f32 to vector<1x1xf32>
      %c0_18 = arith.constant 0 : index
      %c0_19 = arith.constant 0 : index
      %65 = vector.load %arg3[%c0_18, %c0_19] : memref<1x1xf32, #tpu.memory_space<vmem>>, vector<1x1xf32>
      tpu.vector_store %arg3[%c0_18, %c0_19], %64 {strides = array<i32>} : memref<1x1xf32, #tpu.memory_space<vmem>>, vector<1x1xf32>,
    } else {
    }
    %c0 = arith.constant 0 : index
    %c0_1 = arith.constant 0 : index
    %3 = vector.load %arg1[%c0, %c0_1] : memref<14x32xf32, #tpu.memory_space<vmem>>, vector<14x32xf32>
    %4 = vector.extract_strided_slice %3 {offsets = [0, 0], sizes = [4, 32], strides = [1, 1]} : vector<14x32xf32> to vector<4x32xf32>
    %5 = vector.extract_strided_slice %3 {offsets = [4, 0], sizes = [5, 4], strides = [1, 1]} : vector<14x32xf32> to vector<5x4xf32>
    %6 = vector.extract_strided_slice %3 {offsets = [9, 0], sizes = [1, 4], strides = [1, 1]} : vector<14x32xf32> to vector<1x4xf32>
    %7 = vector.extract_strided_slice %3 {offsets = [11, 0], sizes = [1, 32], strides = [1, 1]} : vector<14x32xf32> to vector<1x32xf32>
    %8 = vector.extract_strided_slice %3 {offsets = [12, 0], sizes = [1, 32], strides = [1, 1]} : vector<14x32xf32> to vector<1x32xf32>
    %9 = vector.extract_strided_slice %3 {offsets = [13, 0], sizes = [1, 1], strides = [1, 1]} : vector<14x32xf32> to vector<1x1xf32>
    %c0_2 = arith.constant 0 : index
    %c0_3 = arith.constant 0 : index
    %10 = vector.load %arg2[%c0_2, %c0_3] : memref<8x4xf32, #tpu.memory_space<vmem>>, vector<8x4xf32>
    %11 = vector.extract_strided_slice %10 {offsets = [0, 0], sizes = [8, 1], strides = [1, 1]} : vector<8x4xf32> to vector<8x1xf32>
    %12 = arith.fptosi %11 : vector<8x1xf32> to vector<8x1xi32>
    %13 = vector.extract_strided_slice %10 {offsets = [0, 2], sizes = [8, 1], strides = [1, 1]} : vector<8x4xf32> to vector<8x1xf32>
    %14 = arith.fptosi %13 : vector<8x1xf32> to vector<8x1xi32>
    %15 = vector.extract_strided_slice %10 {offsets = [0, 3], sizes = [8, 1], strides = [1, 1]} : vector<8x4xf32> to vector<8x1xf32>
    %16 = tpu.iota {dimensions = array<i32: 1>} : vector<8x5xi32>
    %17 = vector.broadcast %12 : vector<8x1xi32> to vector<8x5xi32>
    %18 = arith.cmpi eq, %16, %17 : vector<8x5xi32>
    %19 = arith.extui %18 : vector<8x5xi1> to vector<8x5xi32>
    %20 = arith.sitofp %19 : vector<8x5xi32> to vector<8x5xf32>
    %cst = arith.constant dense<0.000000e+00> : vector<8x4xf32>
    %21 = tpu.matmul %20, %5, %cst {dimension_numbers = #tpu.dot_dimension_numbers<[1], [0], [0], [1], [0, 0, 1, 1], [], []>} : vector<8x5xf32>, vector<5x4xf32>, vector<8x4xf32> -> vector<8x4xf32>
    %22 = vector.broadcast %6 : vector<1x4xf32> to vector<8x4xf32>
    %23 = arith.mulf %21, %22 : vector<8x4xf32>
    %cst_4 = arith.constant dense<0.000000e+00> : vector<8xf32>
    %24 = vector.multi_reduction <add>, %23, %cst_4 [1] : vector<8x4xf32> to vector<8xf32>
    %25 = vector.shape_cast %24 : vector<8xf32> to vector<8x1xf32>
    %26 = tpu.reciprocal %25 : vector<8x1xf32> -> vector<8x1xf32>
    %27 = vector.broadcast %26 : vector<8x1xf32> to vector<8x4xf32>
    %28 = arith.mulf %23, %27 : vector<8x4xf32>
    %cst_5 = arith.constant dense<0.000000e+00> : vector<8x32xf32>
    %29 = tpu.matmul %28, %4, %cst_5 {dimension_numbers = #tpu.dot_dimension_numbers<[1], [0], [0], [1], [0, 0, 1, 1], [], []>} : vector<8x4xf32>, vector<4x32xf32>, vector<8x32xf32> -> vector<8x32xf32>
    %30 = vector.broadcast %7 : vector<1x32xf32> to vector<8x32xf32>
    %31 = arith.addf %29, %30 : vector<8x32xf32>
    %cst_6 = arith.constant 0.000000e+00 : f32
    %32 = vector.broadcast %cst_6 : f32 to vector<8x32xf32>
    %33 = arith.maximumf %31, %32 : vector<8x32xf32>
    %34 = vector.broadcast %8 : vector<1x32xf32> to vector<8x32xf32>
    %35 = arith.mulf %33, %34 : vector<8x32xf32>
    %cst_7 = arith.constant dense<0.000000e+00> : vector<8xf32>
    %36 = vector.multi_reduction <add>, %35, %cst_7 [1] : vector<8x32xf32> to vector<8xf32>
    %37 = vector.shape_cast %36 : vector<8xf32> to vector<8x1xf32>
    %38 = vector.broadcast %9 : vector<1x1xf32> to vector<8x1xf32>
    %39 = arith.addf %37, %38 : vector<8x1xf32>
    %cst_8 = arith.constant 0.899999976 : f32
    %40 = vector.broadcast %cst_8 : f32 to vector<8x1xf32>
    %41 = arith.mulf %40, %39 : vector<8x1xf32>
    %42 = tpu.iota {dimensions = array<i32: 1>} : vector<8x4xi32>
    %43 = vector.broadcast %14 : vector<8x1xi32> to vector<8x4xi32>
    %44 = arith.cmpi eq, %42, %43 : vector<8x4xi32>
    %45 = arith.extui %44 : vector<8x4xi1> to vector<8x4xi32>
    %46 = arith.sitofp %45 : vector<8x4xi32> to vector<8x4xf32>
    %47 = arith.mulf %21, %46 : vector<8x4xf32>
    %cst_9 = arith.constant dense<0.000000e+00> : vector<8xf32>
    %48 = vector.multi_reduction <add>, %47, %cst_9 [1] : vector<8x4xf32> to vector<8xf32>
    %49 = vector.shape_cast %48 : vector<8xf32> to vector<8x1xf32>
    %50 = math.log %49 : vector<8x1xf32>
    %51 = arith.mulf %15, %50 : vector<8x1xf32>
    %52 = math.log %25 : vector<8x1xf32>
    %cst_10 = arith.constant 1.000000e+00 : f32
    %53 = vector.broadcast %cst_10 : f32 to vector<8x1xf32>
    %54 = arith.addf %52, %53 : vector<8x1xf32>
    %55 = arith.mulf %41, %54 : vector<8x1xf32>
    %56 = arith.addf %51, %55 : vector<8x1xf32>
    %c0_11 = arith.constant 0 : index
    %c0_12 = arith.constant 0 : index
    %57 = vector.load %arg3[%c0_11, %c0_12] : memref<1x1xf32, #tpu.memory_space<vmem>>, vector<1x1xf32>
    %cst_13 = arith.constant dense<0.000000e+00> : vector<1xf32>
    %58 = vector.multi_reduction <add>, %56, %cst_13 [0] : vector<8x1xf32> to vector<1xf32>
    %59 = vector.shape_cast %58 : vector<1xf32> to vector<1x1xf32>
    %cst_14 = arith.constant 1.250000e-01 : f32
    %60 = vector.broadcast %cst_14 : f32 to vector<1x1xf32>
    %61 = arith.mulf %59, %60 : vector<1x1xf32>
    %62 = arith.addf %57, %61 : vector<1x1xf32>
    %c0_15 = arith.constant 0 : index
    %c0_16 = arith.constant 0 : index
    %63 = vector.load %arg3[%c0_15, %c0_16] : memref<1x1xf32, #tpu.memory_space<vmem>>, vector<1x1xf32>
    tpu.vector_store %arg3[%c0_15, %c0_16], %62 {strides = array<i32>} : memref<1x1xf32, #tpu.memory_space<vmem>>, vector<1x1xf32>,
    return
  }
  func.func @transform_0(%arg0: i32) -> (i32, i32) {
    %c0_i32 = arith.constant 0 : i32
    %c0_i32_0 = arith.constant 0 : i32
    %c0_i32_1 = arith.constant 0 : i32
    return %c0_i32, %c0_i32_0 : i32, i32
  }
  func.func @transform_1(%arg0: i32) -> (i32, i32) {
    %c0_i32 = arith.constant 0 : i32
    %c0_i32_0 = arith.constant 0 : i32
    return %arg0, %c0_i32 : i32, i32
  }
  func.func @transform_2(%arg0: i32) -> (i32, i32) {
    %c0_i32 = arith.constant 0 : i32
    %c0_i32_0 = arith.constant 0 : i32
    %c0_i32_1 = arith.constant 0 : i32
    return %c0_i32, %c0_i32_0 : i32, i32
  }
}

</mosaic_0001>

<bundles_post_ra>
// kernel: tpu_custom_call.1
= control target key start
LH: loop header
LB: loop body
LE: loop exit
PB: predicated region body
PF: predicated region fallthrough
CT: control target
= control target key end

     0   :  { %7 = vsyncpa [#allocation3], 0  ;;  %s428_s0 = inlined_call_operand.hbm [shape: f32[14,32], index: 0, kind: input, shape index: {}]   ;;  %s429_s1 = inlined_call_operand.vmem [shape: f32[8,4], index: 1, kind: input, shape index: {}]   ;;  %s430_s2 = inlined_call_operand.hbm [shape: f32[1,1], index: 2, kind: output, shape index: {}]  }
   0x1   :  { %8 = vsyncpa [#allocation4], 0  ;;  %s387_s9 = smov [#allocation2]  }
   0x2   :  { %s14_s10 = sshll.u32 %s387_s9, 4  ;;  %s15_s10 = int_to_ptr.vmem [resolvable:$true] %s14_s10 }
   0x3   :  { %s351_s11 = scalar_lea.vmem %s15_s10, 256  ;;  %p356_p1 = scmp.lt.s32.totalorder %s15_s10, %s15_s10 }
   0x4   :  { %p352_p0 = scmp.ne.s32.totalorder %s15_s10, %s351_s11  ;;  %p357_p2 = scmp.lt.s32.totalorder %s351_s11, %s351_s11 }
   0x6   :  { %p358_p3 = por %p357_p2, %p356_p1 }
   0x8   :  { %p359_p4 = pnand %p358_p3, %p352_p0 }
   0xa   :  { %362 = shalt.err (!%p359_p4)
}
   0xb   :  { %s388_s12 = smov 128   ;;  %s389_s13 = smov 8  }
   0xc   :  { %20 = dma.hbm_to_vmem [thread:$0]  %s428_s0, 256, %s15_s10, [#allocation3], %s388_s12, %s388_s12, %s389_s13  }
   0xd   :  { %383 = dma.done.wait [#allocation3], 256  }
   0xe   :  { %384 = vsyncadd [#allocation3], 4294967040  ;;  %vm30_vm0 = vcmask 0   ;;  %v390_v0 = vmov 0.0   ;;  %v391_v1 = vmov 0   ;;  %v420_v2 = vld [vmem:[%s429_s1] sm:$0xff]  ;;  %v36_v11 = vlaneseq }
   0xf   :  { %31 = vst.msk [vmem:[#allocation5] sm:$0x1] %vm30_vm0, %v390_v0  ;;  %334 = vset.pattern.permute.xlu0 %v391_v1  ;;  %311 = vmatprep.subr.mxu0 %v390_v0  ;;  %v32_v3 = vld [vmem:[#allocation2] sm:$0xff]  ;;  %v33_v4 = vld [vmem:[#allocation2 + $0x8] sm:$0x3f]  ;;  %vm46_vm1 = vcmask 1043456   ;;  %v321_v5 = vtrunc.f32 %v420_v2 }
  0x10   :  { %316 = vmatprep.subr.mxu1 %v390_v0  ;;  %v47_v6 = vrot.slane %v32_v3, 4  ;;  %v48_v7 = vrot.slane %v33_v4, 4  ;;  %vm54_vm2 = vcmask 1044480   ;;  %vm392_vm3 = vmmov 0   ;;  %s394_s0 = smov 3   ;;  %s396_s1 = smov 125  }
  0x11   :  { %317 = vmatpush3.msk.msra.mxu1 %vm46_vm1, %v32_v3  ;;  %v322_v8 = vcvt.f32.s32 %v321_v5  ;;  %313 = vmatprep.mubr.msk.f32.mxu0 %vm392_vm3, %v390_v0  ;;  %v393_v10 = vmov 2   ;;  %v37_v12 = vand.u32 127, %v36_v11  ;;  %vm50_vm4 = vcmask 39936   ;;  %s397_s18 = smov [#allocation5]  }
  0x12   :  { %v49_v9 = vsel %vm46_vm1, %v47_v6, %v48_v7  ;;  %318 = vmatprep.mubr.msk.f32.mxu1 %vm392_vm3, %v390_v0  ;;  %335 = vset.pattern.permute.xlu1 %v393_v10  ;;  %v128_v15 = vshrl.u32 %v36_v11, 7  ;;  %vm132_vm7 = vcmask 31744   ;;  %vm223_vm8 = vcmask 261120   ;;  %s292_s19 = sshll.u32 %s397_s18, 4  ;;  %s293_s19 = int_to_ptr.vmem [resolvable:$true] %s292_s19 }
  0x13   :  { %312 = vmatpush3.msk.msra.mxu0 %vm54_vm2, %v49_v9  ;;  %39 = vperm.xlu0 %334, %v322_v8   ;;  %vm256_vm9 = vcmask 31768   ;;  %v395_v57 = vmov 1966171168   ;;  %s363_s20 = scalar_lea.vmem %s293_s19, 16  ;;  %s367_s21 = scalar_lea.vmem %s293_s19, 32 }
  0x14   :  { %234 = vperm.xlu1 %335, %v322_v8   ;;  %v129_v16 = vsub.s32 1, %v128_v15  ;;  %v140_v29 = vsub.s32 3, %v128_v15  ;;  %v220_v31 = vsub.s32 4, %v128_v15  ;;  %v229_v39 = vsub.s32 5, %v128_v15  ;;  %p364_p5 = scmp.ne.s32.totalorder %s293_s19, %s363_s20  ;;  %p368_p6 = scmp.lt.s32.totalorder %s293_s19, %s293_s19 }
  0x15   :  { %v267_v58 = vunpack.c.l.s4 %v395_v57  ;;  %p369_p7 = scmp.lt.s32.totalorder %s367_s21, %s363_s20 }
  0x16   :  { %v130_v18 = vrot.slane %v33_v4, %v129_v16  ;;  %v141_v30 = vrot.slane %v33_v4, %v140_v29  ;;  %v221_v34 = vrot.slane %v33_v4, %v220_v31  ;;  %v230_v41 = vrot.slane %v33_v4, %v229_v39 }
  0x17   :  { %336 = vset.pattern.permute.xlu0 %v393_v10  ;;  %v268_v61 = vunpack.c.0.s8 %v267_v58  ;;  %p370_p8 = por %p369_p7, %p368_p6 }
  0x19   :  { %p371_p9 = pnand %p370_p8, %p364_p5 }
  0x8e   :  { %v40_v13 = vpop.permute.xlu0 %39 }
  0x8f   :  { %vm41_vm5 = vcmp.eq.s32.totalorder %v37_v12, %v40_v13  ;;  %v235_v17 = vpop.permute.xlu1 %234 }
  0x90   :  { %v301_v14 = vsel %vm41_vm5, 1.0, %v390_v0  ;;  %vm236_vm6 = vcmp.eq.s32.totalorder %v37_v12, %v235_v17 }
  0x91   :  { %314 = vmatmul.mubr.msk.f32.vlgmr.msra.gmra.mxu0 %vm50_vm4, %v301_v14  ;;  %v306_v19 = vsel %vm236_vm6, 1.0, %v390_v0  ;;  %v271_v0 = vsub.s32 %v268_v61, %v128_v15 }
 0x151   :  { %v123_v20 = vpop.f32.mrf.mxu0 }
 0x152   :  { %v131_v21 = vmul.f32 %v130_v18, %v123_v20  ;;  %v239_v23 = vmul.f32 %v306_v19, %v123_v20 }
 0x153   :  { %v315_v22 = vpop.f32.mrf.mxu0 }
 0x154   :  { %v133_v24 = vsel %vm132_vm7, %v131_v21, 0.0  ;;  %v240_v25 = vsel %vm132_vm7, %v239_v23, 0.0 }
 0x155   :  { %134 = vadd.xlane.f32.xlu0 %v133_v24 }
 0x159   :  { %241 = vadd.xlane.f32.xlu0 %v240_v25 }
 0x1de   :  { %v135_v26 = vpop.xlane.xlu0 %134 }
 0x1df   :  { %337 = vrcp.f32 %v135_v26 }
 0x1e0   :  { %339 = vlog2.f32 %v135_v26 }
 0x1e2   :  { %v242_v48 = vpop.xlane.xlu0 %241 }
 0x1e3   :  { %341 = vlog2.f32 %v242_v48 }
 0x1ec   :  { %v338_v27 = vpop.eup %337 }
 0x1ed   :  { %v137_v28 = vmul.f32 %v338_v27, %v131_v21  ;;  %v340_v40 = vpop.eup %339 }
 0x1ee   :  { %v247_v42 = vmul.f32 0.6931472, %v340_v40 }
 0x1ef   :  { %319 = vmatmul.mubr.msk.f32.vlgmr.msra.gmra.mxu1 %vm132_vm7, %v137_v28 }
 0x1f0   :  { %v248_v45 = vadd.f32 1.0, %v247_v42  ;;  %v342_v49 = vpop.eup %341 }
 0x1f1   :  { %v244_v50 = vmul.f32 0.6931472, %v342_v49 }
 0x1f3   :  { %v245_v51 = vmul.f32 %v244_v50, %v420_v2  ;;  %v255_v2 = vld [vmem:[#allocation5] sm:$0x1] }
 0x2af   :  { %v213_v32 = vpop.f32.mrf.mxu1 }
 0x2b0   :  { %v214_v33 = vadd.f32 %v213_v32, %v141_v30 }
 0x2b1   :  { %v320_v35 = vpop.f32.mrf.mxu1 }
 0x2b2   :  { %v217_v36 = vmax.f32 %v214_v33, 0.0 }
 0x2b4   :  { %v222_v37 = vmul.f32 %v221_v34, %v217_v36 }
 0x2b6   :  { %v224_v38 = vsel %vm223_vm8, %v222_v37, 0.0 }
 0x2b7   :  { %225 = vadd.xlane.f32.xlu1 %v224_v38 }
 0x340   :  { %v226_v43 = vpop.xlane.xlu1 %225 }
 0x341   :  { %v231_v44 = vadd.f32 %v230_v41, %v226_v43 }
 0x343   :  { %v232_v46 = vmul.f32 0.9, %v231_v44 }
 0x345   :  { %v249_v47 = vmul.f32 %v248_v45, %v232_v46 }
 0x347   :  { %251 = vrot.lane.b32.xlu0 %v249_v47, %s394_s0 }
 0x3b9   :  { %v252_v52 = vpop.permute.xlu0 %251 }
 0x3ba   :  { %v254_v53 = vadd.f32 %v252_v52, %v245_v51 }
 0x3bc   :  { %v257_v54 = vsel %vm256_vm9, %v254_v53, 0.0 }
 0x3bd   :  { %v258_v55 = vrot.slane %v257_v54, 4 }
 0x3bf   :  { %v259_v56 = vadd.f32 %v258_v55, %v257_v54 }
 0x3c1   :  { %v260_v59 = vrot.slane %v259_v56, 2 }
 0x3c3   :  { %v261_v60 = vadd.f32 %v260_v59, %v259_v56 }
 0x3c5   :  { %v262_v62 = vrot.slane %v261_v60, 1 }
 0x3c7   :  { %v263_v63 = vadd.f32 %v262_v62, %v261_v60 }
 0x3c9   :  { %v264_v1 = vmul.f32 0.125, %v263_v63 }
 0x3cb   :  { %v272_v3 = vrot.slane %v264_v1, %v271_v0 }
 0x3cd   :  { %v279_v4 = vrot.slane %v272_v3, %v271_v0 }
 0x3cf   :  { %280 = vrot.lane.b32.xlu1 %v279_v4, %s396_s1 }
 0x441   :  { %v281_v5 = vpop.permute.xlu1 %280 }
 0x442   :  { %v283_v6 = vadd.f32 %v281_v5, %v255_v2 }
 0x444   :  { %285 = vst.msk [vmem:[#allocation5] sm:$0x1] %vm30_vm0, %v283_v6 }
 0x445   :  { %374 = shalt.err (!%p371_p9)
}
 0x446   :  { %295 = dma.vmem_to_hbm [thread:$0]  %s293_s19, 16, %s430_s2, [#allocation4]  }
 0x447   :  { %385 = dma.done.wait [#allocation4], 16  }
 0x448   :  { %386 = vsyncadd [#allocation4], 4294967280 }
 0x449   :  { %299 = vsyncpa [#allocation3], 1 }
 0x44a   :  { %300 = vsyncpa [#allocation4], 1 }

</bundles_post_ra>
